<compile_context>
chip_gen: v5e
topology: v5e:2x2
jax: 0.10.0
libtpu: 0.0.40
codegen_flags: <defaults>
</compile_context>

<pallas_src>
import jax
import jax.numpy as jnp
from jax.experimental import pallas as pl
from jax.experimental.pallas import tpu as pltpu

_SUBLANE = 8
_MAX_TILE_B = 512
_NEG_PAD = -1e30                    # bias of padded output columns (exp -> exactly 0)
_VMEM_BUDGET = 20 * 1024 * 1024     # sizing budget: under every gen's scoped limit
_VMEM_LIMIT = 32 * 1024 * 1024      # scoped limit we request (<= v7x 64 MiB physical)


def _round_up(x, m):
    return ((x + m - 1) // m) * m


def _n_align(num_outputs):
    # 128 keeps the logits writeback minimal for small heads (kernel is HBM
    # bound); 256 fills both 256x256 MXU arrays on v6e/v7x for large heads.
    return 128 if num_outputs <= 128 else 256


def _pick_tile_b(b_pad, k, n_pad, x_bytes, w_bytes):
    """Largest sublane-aligned batch tile that fits the VMEM budget, capped so
    the grid has >= 4 steps when the batch allows it."""
    fixed = 2 * (n_pad * k * w_bytes + n_pad * 4)       # weight + bias (2 buffers)
    per_row = 2 * (k * x_bytes + n_pad * 4 + 4)         # x tile + logits + lse (2 buffers)
    budget_rows = max((_VMEM_BUDGET - fixed) // per_row, _SUBLANE)
    tile = (budget_rows // _SUBLANE) * _SUBLANE
    tile = min(tile, _MAX_TILE_B, _round_up(pl.cdiv(b_pad, 4), _SUBLANE))
    return max(tile, _SUBLANE)


def _categorical_net_kernel(x_ref, w_ref, b_ref, logits_ref, lse_ref):
    # Cast activations to bf16 in-register (VPU) so the MXU runs a native bf16
    # pass against the bf16-resident weight; accumulate in f32.
    x = x_ref[...].astype(jnp.bfloat16)
    # logits = x @ W^T + b: contract the feature axis of both operands (trans_b
    # is handled natively by the MXU -> no wrapper-side weight transpose).
    logits = jax.lax.dot_general(
        x, w_ref[...],
        dimension_numbers=(((1,), (1,)), ((), ())),
        preferred_element_type=jnp.float32,
    )
    logits = logits + b_ref[...]                       # f32 bias broadcast over rows
    logits_ref[...] = logits.astype(logits_ref.dtype)

    # Per-row log-sum-exp (stable, f32). Padded columns carry a -1e30 bias:
    # they never win the max and exp() of them underflows to exactly 0.
    m = jnp.max(logits, axis=-1, keepdims=True)
    lse = m + jnp.log(jnp.sum(jnp.exp(logits - m), axis=-1, keepdims=True))
    # TODO(synk): write lse lane-dense (transposed [1, B] output) once tile_b is
    # guaranteed 128-aligned; the bytes here are negligible vs the logits block.
    lse_ref[...] = lse.astype(lse_ref.dtype)


@jax.jit
def categorical_net_forward(x, w_pad, b_pad):
    """x: [B, K] (f32 or bf16), w_pad: [N_pad, K] bf16, b_pad: [1, N_pad] f32.

    Returns padded (raw_logits [B_pad, N_pad] f32, lse [B_pad, 1] f32);
    log-probs = raw_logits - lse. Rows >= B / columns >= num_outputs are
    padding (padded columns sit at ~-1e30 and never affect sampling/gathers).
    """
    B, K = x.shape
    N_pad = w_pad.shape[0]

    # Pad the batch only to the 8-row sublane; the (possibly partial) last grid
    # tile is handled by Pallas boundary masking, so no per-call copy of x is
    # needed when B is already a multiple of 8.
    B_pad = _round_up(B, _SUBLANE)
    if B_pad != B:
        x = jnp.pad(x, ((0, B_pad - B), (0, 0)))

    tile_b = _pick_tile_b(B_pad, K, N_pad, x.dtype.itemsize, w_pad.dtype.itemsize)
    grid_b = pl.cdiv(B_pad, tile_b)
    rows = grid_b * tile_b

    # TODO(synk): add a trailing "arbitrary" K grid axis with an f32 accumulator
    # (pl.when init / bias+LSE finalize) once 2*(tile_b + N_pad)*K bytes pressures
    # the VMEM budget (mainly v7x's 64 MiB); single-pass keeps writeback minimal.
    # TODO(synk): mark the weight/bias BlockSpecs pipeline_mode=pl.Buffered(1)
    # (constant index_map) to drop one resident weight buffer on v7x once
    # single-buffering is verified on the target jax build.
    cost = pl.CostEstimate(
        flops=int(2 * rows * K * N_pad),
        transcendentals=int(rows * (N_pad + 1)),
        bytes_accessed=int(
            B_pad * K * x.dtype.itemsize          # activations in
            + N_pad * K * w_pad.dtype.itemsize    # weight in
            + N_pad * 4                           # bias in
            + B_pad * N_pad * 4                   # raw logits out
            + B_pad * 4),                         # lse out
    )

    raw_logits, lse = pl.pallas_call(
        _categorical_net_kernel,
        out_shape=(
            jax.ShapeDtypeStruct((B_pad, N_pad), jnp.float32),
            jax.ShapeDtypeStruct((B_pad, 1), jnp.float32),
        ),
        grid_spec=pltpu.PrefetchScalarGridSpec(
            num_scalar_prefetch=0,
            grid=(grid_b,),
            in_specs=[
                pl.BlockSpec((tile_b, K), lambda i: (i, 0)),   # x: batch-tiled
                pl.BlockSpec((N_pad, K), lambda i: (0, 0)),    # weight: resident
                pl.BlockSpec((1, N_pad), lambda i: (0, 0)),    # bias: resident
            ],
            out_specs=[
                pl.BlockSpec((tile_b, N_pad), lambda i: (i, 0)),  # raw logits
                pl.BlockSpec((tile_b, 1), lambda i: (i, 0)),      # log-sum-exp
            ],
        ),
        compiler_params=pltpu.CompilerParams(
            dimension_semantics=("parallel",),
            vmem_limit_bytes=_VMEM_LIMIT,
        ),
        cost_estimate=cost,
    )(x, w_pad, b_pad)
    return raw_logits, lse


class CustomFixedCategorical:
    """Minimal mirror of the PyTorch CustomFixedCategorical (logits / sample /
    log_probs) built from the kernel's (raw_logits, lse) outputs. It keeps the
    padded buffers internally to avoid re-materializing the [B, N] logits."""

    def __init__(self, raw_logits_pad, lse_pad, batch, num_outputs):
        self._raw = raw_logits_pad      # [B_pad, N_pad] unnormalized logits
        self._lse = lse_pad             # [B_pad, 1] per-row log-sum-exp
        self._batch = batch
        self._num_outputs = num_outputs

    @property
    def logits(self):
        # torch.distributions.Categorical stores normalized logits (log-probs).
        normed = self._raw - self._lse
        if normed.shape == (self._batch, self._num_outputs):
            return normed
        return normed[: self._batch, : self._num_outputs]

    def sample(self, key):
        # Categorical sampling is shift-invariant -> raw logits are fine;
        # padded columns at -1e30 are never drawn, padded rows are sliced off.
        return jax.random.categorical(key, self._raw, axis=-1)[: self._batch]

    def log_probs(self, actions):
        # actions: [B, 1] int -> [B, 1] log-prob (matches the PyTorch reference).
        a = actions[:, 0]
        raw = self._raw[: actions.shape[0]]
        lse = self._lse[: actions.shape[0]]
        lp = jnp.take_along_axis(raw, a[:, None], axis=-1) - lse
        return lp.reshape(actions.shape[0], -1).sum(-1)[:, None]


class CategoricalNet:
    def __init__(self, num_inputs, num_outputs, key):
        k_w, k_b = jax.random.split(key)
        bound = 1.0 / float(num_inputs) ** 0.5
        # nn.Linear layout: W [out, in], b [out] (kept in f32 as master params).
        self.weight = jax.random.uniform(
            k_w, (num_outputs, num_inputs), jnp.float32, -bound, bound)
        self.bias = jax.random.uniform(
            k_b, (num_outputs,), jnp.float32, -bound, bound)
        self.num_outputs = num_outputs

        # One-time lane-dense padding + bf16 cast of the parameters. Padded bias
        # = -1e30 masks the extra columns out of the softmax; padded weight rows
        # are zero so they contribute nothing to the matmul. K (num_inputs) is
        # left unpadded: padding it would force a per-call HBM copy of x that
        # costs more than the masked lane loads it avoids at small K.
        n_pad = _round_up(num_outputs, _n_align(num_outputs))
        self._w_pad = jnp.pad(
            self.weight, ((0, n_pad - num_outputs), (0, 0))).astype(jnp.bfloat16)
        self._b_pad = jnp.pad(
            self.bias, (0, n_pad - num_outputs),
            constant_values=_NEG_PAD).reshape(1, n_pad)

    def forward(self, x):
        raw_pad, lse_pad = categorical_net_forward(x, self._w_pad, self._b_pad)
        dist = CustomFixedCategorical(raw_pad, lse_pad, x.shape[0], self.num_outputs)
        # API-boundary slice only (the dist itself keeps the padded buffers).
        if raw_pad.shape == (x.shape[0], self.num_outputs):
            logits = raw_pad
        else:
            logits = raw_pad[: x.shape[0], : self.num_outputs]
        return dist, logits


if __name__ == "__main__":
    key = jax.random.PRNGKey(0)
    k_x, k_net, k_s = jax.random.split(key, 3)

    batch, num_inputs, num_outputs = 8, 32, 16
    x = jax.random.normal(k_x, (batch, num_inputs), jnp.float32)

    net = CategoricalNet(num_inputs, num_outputs, k_net)
    dist, logits = net.forward(x)
    jax.block_until_ready(logits)
    norm_logits = dist.logits
    jax.block_until_ready(norm_logits)

    # Pure-JAX reference using the same bf16-rounded activations / weights the
    # kernel sees (accumulation in f32 in both cases).
    x_bf = x.astype(jnp.bfloat16).astype(jnp.float32)
    w_bf = net.weight.astype(jnp.bfloat16).astype(jnp.float32)
    ref_logits = x_bf @ w_bf.T + net.bias
    ref_logp = jax.nn.log_softmax(ref_logits, axis=-1)

    assert logits.shape == (batch, num_outputs)
    assert norm_logits.shape == (batch, num_outputs)
    assert jnp.allclose(logits, ref_logits, atol=1e-3, rtol=1e-3)
    assert jnp.allclose(norm_logits, ref_logp, atol=1e-3, rtol=1e-3)

    # Exercise the distribution API.
    actions = dist.sample(k_s)[:, None]
    assert actions.shape == (batch, 1)
    assert int(jnp.max(actions)) < num_outputs
    lp = dist.log_probs(actions)
    jax.block_until_ready(lp)
    ref_lp = jnp.take_along_axis(ref_logp, actions, axis=-1)
    assert lp.shape == (batch, 1)
    assert jnp.allclose(lp, ref_lp, atol=1e-3, rtol=1e-3)

    print("KERNEL_OK")
</pallas_src>

<mosaic_0001>
module attributes {stable_mosaic.version = 11 : i64} {
  func.func @_categorical_net_kernel(%arg0: i32, %arg1: memref<8x32xf32, #tpu.memory_space<vmem>>, %arg2: memref<128x32xbf16, #tpu.memory_space<vmem>>, %arg3: memref<1x128xf32, #tpu.memory_space<vmem>>, %arg4: memref<8x128xf32, #tpu.memory_space<vmem>>, %arg5: memref<8x1xf32, #tpu.memory_space<vmem>>) attributes {dimension_semantics = [#tpu.dimension_semantics<parallel>], iteration_bounds = array<i64: 1>, scalar_prefetch = 0 : i64, scratch_operands = 0 : i64, tpu.core_type = #tpu.core_type<tc>, window_params = [{transform_indices = @transform_0, window_bounds = array<i64: 8, 32>}, {pipeline_mode = #tpu.pipeline_mode<synchronous>, transform_indices = @transform_1, window_bounds = array<i64: 128, 32>}, {pipeline_mode = #tpu.pipeline_mode<synchronous>, transform_indices = @transform_2, window_bounds = array<i64: 1, 128>}, {transform_indices = @transform_3, window_bounds = array<i64: 8, 128>}, {transform_indices = @transform_4, window_bounds = array<i64: 8, 1>}]} {
    %c0 = arith.constant 0 : index
    %c0_0 = arith.constant 0 : index
    %0 = vector.load %arg1[%c0, %c0_0] : memref<8x32xf32, #tpu.memory_space<vmem>>, vector<8x32xf32>
    %1 = arith.truncf %0 : vector<8x32xf32> to vector<8x32xbf16>
    %c0_1 = arith.constant 0 : index
    %c0_2 = arith.constant 0 : index
    %2 = vector.load %arg2[%c0_1, %c0_2] : memref<128x32xbf16, #tpu.memory_space<vmem>>, vector<128x32xbf16>
    %cst = arith.constant dense<0.000000e+00> : vector<8x128xf32>
    %3 = tpu.matmul %1, %2, %cst {dimension_numbers = #tpu.dot_dimension_numbers<[1], [1], [0], [0], [0, 0, 1, 0], [], []>} : vector<8x32xbf16>, vector<128x32xbf16>, vector<8x128xf32> -> vector<8x128xf32>
    %c0_3 = arith.constant 0 : index
    %c0_4 = arith.constant 0 : index
    %4 = vector.load %arg3[%c0_3, %c0_4] : memref<1x128xf32, #tpu.memory_space<vmem>>, vector<1x128xf32>
    %5 = vector.broadcast %4 : vector<1x128xf32> to vector<8x128xf32>
    %6 = arith.addf %3, %5 : vector<8x128xf32>
    %c0_5 = arith.constant 0 : index
    %c0_6 = arith.constant 0 : index
    %7 = vector.load %arg4[%c0_5, %c0_6] : memref<8x128xf32, #tpu.memory_space<vmem>>, vector<8x128xf32>
    tpu.vector_store %arg4[%c0_5, %c0_6], %6 {strides = array<i32>} : memref<8x128xf32, #tpu.memory_space<vmem>>, vector<8x128xf32>,
    %cst_7 = arith.constant dense<0xFF800000> : vector<8xf32>
    %8 = vector.multi_reduction <maximumf>, %6, %cst_7 [1] : vector<8x128xf32> to vector<8xf32>
    %9 = vector.shape_cast %8 : vector<8xf32> to vector<8x1xf32>
    %10 = vector.broadcast %9 : vector<8x1xf32> to vector<8x128xf32>
    %11 = arith.subf %6, %10 : vector<8x128xf32>
    %12 = math.exp %11 : vector<8x128xf32>
    %cst_8 = arith.constant dense<0.000000e+00> : vector<8xf32>
    %13 = vector.multi_reduction <add>, %12, %cst_8 [1] : vector<8x128xf32> to vector<8xf32>
    %14 = vector.shape_cast %13 : vector<8xf32> to vector<8x1xf32>
    %15 = math.log %14 : vector<8x1xf32>
    %16 = arith.addf %9, %15 : vector<8x1xf32>
    %c0_9 = arith.constant 0 : index
    %c0_10 = arith.constant 0 : index
    %17 = vector.load %arg5[%c0_9, %c0_10] : memref<8x1xf32, #tpu.memory_space<vmem>>, vector<8x1xf32>
    tpu.vector_store %arg5[%c0_9, %c0_10], %16 {strides = array<i32>} : memref<8x1xf32, #tpu.memory_space<vmem>>, vector<8x1xf32>,
    return
  }
  func.func @transform_0(%arg0: i32) -> (i32, i32) {
    %c0_i32 = arith.constant 0 : i32
    %c0_i32_0 = arith.constant 0 : i32
    return %arg0, %c0_i32 : i32, i32
  }
  func.func @transform_1(%arg0: i32) -> (i32, i32) {
    %c0_i32 = arith.constant 0 : i32
    %c0_i32_0 = arith.constant 0 : i32
    %c0_i32_1 = arith.constant 0 : i32
    return %c0_i32, %c0_i32_0 : i32, i32
  }
  func.func @transform_2(%arg0: i32) -> (i32, i32) {
    %c0_i32 = arith.constant 0 : i32
    %c0_i32_0 = arith.constant 0 : i32
    %c0_i32_1 = arith.constant 0 : i32
    return %c0_i32, %c0_i32_0 : i32, i32
  }
  func.func @transform_3(%arg0: i32) -> (i32, i32) {
    %c0_i32 = arith.constant 0 : i32
    %c0_i32_0 = arith.constant 0 : i32
    return %arg0, %c0_i32 : i32, i32
  }
  func.func @transform_4(%arg0: i32) -> (i32, i32) {
    %c0_i32 = arith.constant 0 : i32
    %c0_i32_0 = arith.constant 0 : i32
    return %arg0, %c0_i32 : i32, i32
  }
}

</mosaic_0001>

<bundles_post_ra>
// kernel: categorical_net_forward.1
= control target key start
LH: loop header
LB: loop body
LE: loop exit
PB: predicated region body
PF: predicated region fallthrough
CT: control target
= control target key end

     0   :  { %vm79_vm0 = vcmask 261120   ;;  %s297_s0 = inlined_call_operand.vmem [shape: f32[8,32], index: 0, kind: input, shape index: {}]   ;;  %s298_s1 = inlined_call_operand.vmem [shape: bf16[128,32], index: 1, kind: input, shape index: {}]   ;;  %s299_s2 = inlined_call_operand.vmem [shape: f32[1,128], index: 2, kind: input, shape index: {}]   ;;  %s300_s3 = inlined_call_operand.hbm [shape: f32[8,128], index: 3, kind: output, shape index: {0}]   ;;  %s301_s4 = inlined_call_operand.vmem [shape: f32[8,1], index: 4, kind: output, shape index: {1}]  }
   0x1   :  { %v193_v0 = vld [vmem:[%s298_s1 + $0x38] sm:$0xff] }
   0x2   :  { %v105_v1 = vsel %vm79_vm0, %v193_v0, 0 }
   0x3   :  { %10 = vsyncpa [#allocation3], 0  ;;  %107 = vmatpush.bf16.xpose.msra.mxu0 %v105_v1  ;;  %v192_v2 = vld [vmem:[%s298_s1 + $0x30] sm:$0xff]  ;;  %v191_v4 = vld [vmem:[%s298_s1 + $0x28] sm:$0xff]  ;;  %s140_s11 = sshll.u32 %s300_s3, 4  ;;  %vm131_vm1 = vcmask 7168   ;;  %s141_s11 = int_to_ptr.hbm [resolvable:$true] %s140_s11 }
   0x4   :  { %v102_v3 = vsel %vm79_vm0, %v192_v2, 0  ;;  %v99_v5 = vsel %vm79_vm0, %v191_v4, 0  ;;  %v190_v6 = vld [vmem:[%s298_s1 + $0x20] sm:$0xff]  ;;  %v189_v8 = vld [vmem:[%s298_s1 + $0x18] sm:$0xff]  ;;  %v188_v10 = vld [vmem:[%s298_s1 + $0x10] sm:$0xff] }
   0x5   :  { %v96_v7 = vsel %vm79_vm0, %v190_v6, 0  ;;  %v93_v9 = vsel %vm79_vm0, %v189_v8, 0  ;;  %v90_v11 = vsel %vm79_vm0, %v188_v10, 0  ;;  %v187_v12 = vld [vmem:[%s298_s1 + $0x8] sm:$0xff]  ;;  %v186_v14 = vld [vmem:[%s298_s1] sm:$0xff]  ;;  %s226_s1 = smov [#allocation2]  }
   0x6   :  { %v87_v13 = vsel %vm79_vm0, %v187_v12, 0  ;;  %v84_v15 = vsel %vm79_vm0, %v186_v14, 0  ;;  %v17_v16 = vld [vmem:[%s297_s0] sm:$0xff]  ;;  %s138_s9 = sshll.u32 %s226_s1, 4  ;;  %s139_s9 = int_to_ptr.vmem [resolvable:$true] %s138_s9 }
   0x7   :  { %v18_v17 = vpack.c.bf16 %v17_v16, %v17_v16  ;;  %v195_v18 = vld [vmem:[%s299_s2] ss:$0 sm:$0xff] }
   0xb   :  { %108 = vmatpush.bf16.xpose.msra.mxu0 %v102_v3 }
  0x13   :  { %109 = vmatpush.bf16.xpose.msra.mxu0 %v99_v5 }
  0x1b   :  { %110 = vmatpush.bf16.xpose.msra.mxu0 %v96_v7 }
  0x23   :  { %111 = vmatpush.bf16.xpose.msra.mxu0 %v93_v9 }
  0x2b   :  { %112 = vmatpush.bf16.xpose.msra.mxu0 %v90_v11 }
  0x33   :  { %113 = vmatpush.bf16.xpose.msra.mxu0 %v87_v13 }
  0x3b   :  { %114 = vmatpush.bf16.xpose.msra.mxu0 %v84_v15 }
  0x42   :  { %185 = vmatmul.msk.bf16.vlgmr.msra.gmra.mxu0 %vm79_vm0, %v18_v17 }
  0xbf   :  { %v116_v19 = vpop.f32.mrf.mxu0 }
  0xc0   :  { %v117_v20 = vadd.f32 %v195_v18, %v116_v19 }
  0xc2   :  { %120 = vst [vmem:[#allocation2] sm:$0xff] %v117_v20  ;;  %121 = vmax.xlane.f32.xlu0 %v117_v20 }
  0xc3   :  { %143 = dma.vmem_to_hbm [thread:$0]  %s139_s9, 128, %s141_s11, [#allocation3]  }
  0xc7   :  { %v118_v21 = vpop.f32.mrf.mxu0 }
 0x135   :  { %v122_v22 = vpop.xlane.xlu0 %121 }
 0x136   :  { %v123_v23 = vsub.f32 %v117_v20, %v122_v22 }
 0x138   :  { %v124_v24 = vmul.f32 1.442695, %v123_v23 }
 0x13a   :  { %196 = vpow2.f32 %v124_v24 }
 0x140   :  { %v197_v25 = vpop.eup %196 }
 0x141   :  { %126 = vadd.xlane.f32.xlu0 %v197_v25 }
 0x1b4   :  { %v127_v26 = vpop.xlane.xlu0 %126 }
 0x1b5   :  { %198 = vlog2.f32 %v127_v26 }
 0x1bb   :  { %v199_v27 = vpop.eup %198 }
 0x1bc   :  { %v129_v28 = vmul.f32 0.6931472, %v199_v27 }
 0x1be   :  { %v130_v29 = vadd.f32 %v129_v28, %v122_v22 }
 0x1c0   :  { %132 = vst.msk [vmem:[%s301_s4] sm:$0xff] %vm131_vm1, %v130_v29 }
 0x1c1   :  { %224 = dma.done.wait [#allocation3], 128  }
 0x1c2   :  { %225 = vsyncadd [#allocation3], 4294967168 }
 0x1c3   :  { %152 = vsyncpa [#allocation3], 1 }

</bundles_post_ra>
